<compile_context>
chip_gen: v7x
topology: tpu7x:2x2x1
jax: 0.10.0
libtpu: 0.0.40
codegen_flags: <defaults>
</compile_context>

<pallas_src>
import jax
import jax.numpy as jnp
from jax.experimental import pallas as pl
from jax.experimental.pallas import tpu as pltpu

HIDDEN = 64


def _dqn_kernel(s_ref, a_ref, w1_ref, b1_ref, w2_ref, b2_ref, o_ref):
    # s_ref : [tile, in_s] f32      a_ref : [tile, in_a] f32
    # w1_ref: [in_s+in_a, 64] f32   b1_ref/w2_ref: [1, 64] f32   b2_ref: [1, 1] f32
    # o_ref : [1, tile] f32   (lane-dense output row)
    #
    # fc1: in-register concat (the concatenated activation never exists in HBM)
    # + a single bf16 MXU matmul with f32 accumulation.
    x = jnp.concatenate([s_ref[...], a_ref[...]], axis=-1).astype(jnp.bfloat16)
    h = jnp.dot(x, w1_ref[...].astype(jnp.bfloat16),
                preferred_element_type=jnp.float32)
    h = jnp.maximum(h + b1_ref[...], 0.0)                      # fc1 bias + ReLU
    # out layer (64 -> 1): VPU multiply + lane reduce; MXU stays on fc1 only.
    y = jnp.sum(h * w2_ref[...], axis=-1, keepdims=True) + b2_ref[...]  # [tile, 1]
    # Lane-dense store: sublane->lane relayout on the idle XLU.
    o_ref[...] = jnp.transpose(y)                                        # [1, tile]


def _round_up(x, m):
    return (x + m - 1) // m * m


def dqn_forward(state, action, params, *, block_b=8192):
    """state: [B, in_states] f32, action: [B, in_actions] f32 -> [B, 1] f32."""
    w1, b1, w2, b2 = params
    B, in_s = state.shape
    in_a = action.shape[1]
    d_in = in_s + in_a
    assert w1.shape == (d_in, HIDDEN)
    assert block_b % 8 == 0 and block_b >= 8

    # Tile: at most block_b rows per grid step, but split the batch into >= 2
    # tiles when possible so the "parallel" axis can shard across v7x's two TCs.
    half = _round_up(max(pl.cdiv(B, 2), 1), 8)
    tile = max(8, min(block_b, half))
    num_tiles = pl.cdiv(B, tile)       # ragged batch -> partial trailing block

    cost = pl.CostEstimate(
        flops=2 * B * (d_in * HIDDEN + HIDDEN),
        transcendentals=0,
        bytes_accessed=int(
            B * (d_in * 4 + 4)                                   # f32 acts in + f32 out
            + (w1.size + b1.size + w2.size + b2.size) * 4        # f32 params
        ),
    )

    out = pl.pallas_call(
        _dqn_kernel,
        out_shape=jax.ShapeDtypeStruct((1, num_tiles * tile), jnp.float32),
        grid_spec=pltpu.PrefetchScalarGridSpec(
            num_scalar_prefetch=0,
            grid=(num_tiles,),
            in_specs=[
                pl.BlockSpec((tile, in_s), lambda i: (i, 0)),     # streamed
                pl.BlockSpec((tile, in_a), lambda i: (i, 0)),     # streamed
                pl.BlockSpec((d_in, HIDDEN), lambda i: (0, 0)),   # VMEM-resident
                pl.BlockSpec((1, HIDDEN), lambda i: (0, 0)),
                pl.BlockSpec((1, HIDDEN), lambda i: (0, 0)),
                pl.BlockSpec((1, 1), lambda i: (0, 0)),
            ],
            out_specs=pl.BlockSpec((1, tile), lambda i: (0, i)),  # lane-dense row
        ),
        compiler_params=pltpu.CompilerParams(
            dimension_semantics=("parallel",),        # v7x: both TensorCores
            vmem_limit_bytes=48 * 1024 * 1024,        # headroom under v7x 64 MiB
        ),
        cost_estimate=cost,
    )(state, action, w1, b1, w2, b2)

    # (1, num_tiles*tile) -> (B, 1); lanes past B came from the partial trailing
    # input block (garbage rows) and are discarded here.
    return out.reshape(-1, 1)[:B]


def init_params(key, in_states, in_actions, hidden=HIDDEN):
    """Deterministic init mimicking torch.nn.Linear (U[-1/sqrt(fan_in), +])."""
    d_in = in_states + in_actions
    k1, k2, k3, k4 = jax.random.split(key, 4)
    bound1 = 1.0 / (d_in ** 0.5)
    bound2 = 1.0 / (hidden ** 0.5)
    # fc1 weight stored transposed ([d_in, 64]); state rows first, action rows
    # last — matching torch.cat([state, action], dim=-1).
    w1 = jax.random.uniform(k1, (d_in, hidden), jnp.float32, -bound1, bound1)
    b1 = jax.random.uniform(k2, (1, hidden), jnp.float32, -bound1, bound1)
    w2 = jax.random.uniform(k3, (1, hidden), jnp.float32, -bound2, bound2)  # out.weight row
    b2 = jax.random.uniform(k4, (1, 1), jnp.float32, -bound2, bound2)
    return (w1, b1, w2, b2)


def dqn_forward_ref(state, action, params):
    """Pure-JAX reference with the same precision policy as the kernel."""
    w1, b1, w2, b2 = params
    x = jnp.concatenate([state, action], axis=-1).astype(jnp.bfloat16)
    h = jnp.dot(x, w1.astype(jnp.bfloat16),
                preferred_element_type=jnp.float32) + b1
    h = jnp.maximum(h, 0.0)
    return jnp.sum(h * w2, axis=-1, keepdims=True) + b2


if __name__ == "__main__":
    IN_STATES, IN_ACTIONS = 12, 4

    key = jax.random.PRNGKey(0)
    kp, ks, ka = jax.random.split(key, 3)
    params = init_params(kp, IN_STATES, IN_ACTIONS)

    # Small demo batch (single tile).
    B = 8
    state = jax.random.normal(ks, (B, IN_STATES), jnp.float32)
    action = jax.random.normal(ka, (B, IN_ACTIONS), jnp.float32)
    out = jax.block_until_ready(dqn_forward(state, action, params))
    ref = dqn_forward_ref(state, action, params)
    assert out.shape == (B, 1)
    assert jnp.allclose(out, ref, atol=1e-4, rtol=1e-4)

    # Gridded path: ragged batch (cdiv grid + partial trailing block, no pad)
    # and multiple "parallel" tiles.
    B2 = 300
    state2 = jax.random.normal(ks, (B2, IN_STATES), jnp.float32)
    action2 = jax.random.normal(ka, (B2, IN_ACTIONS), jnp.float32)
    out2 = jax.block_until_ready(dqn_forward(state2, action2, params, block_b=128))
    ref2 = dqn_forward_ref(state2, action2, params)
    assert out2.shape == (B2, 1)
    assert jnp.allclose(out2, ref2, atol=1e-4, rtol=1e-4)

    print("KERNEL_OK")
</pallas_src>

<mosaic_0001>
module attributes {stable_mosaic.version = 11 : i64} {
  func.func @_dqn_kernel(%arg0: i32, %arg1: memref<8x12xf32, #tpu.memory_space<vmem>>, %arg2: memref<8x4xf32, #tpu.memory_space<vmem>>, %arg3: memref<16x64xf32, #tpu.memory_space<vmem>>, %arg4: memref<1x64xf32, #tpu.memory_space<vmem>>, %arg5: memref<1x64xf32, #tpu.memory_space<vmem>>, %arg6: memref<1x1xf32, #tpu.memory_space<vmem>>, %arg7: memref<1x8xf32, #tpu.memory_space<vmem>>) attributes {dimension_semantics = [#tpu.dimension_semantics<parallel>], iteration_bounds = array<i64: 1>, scalar_prefetch = 0 : i64, scratch_operands = 0 : i64, tpu.core_type = #tpu.core_type<tc>, window_params = [{transform_indices = @transform_0, window_bounds = array<i64: 8, 12>}, {transform_indices = @transform_1, window_bounds = array<i64: 8, 4>}, {pipeline_mode = #tpu.pipeline_mode<synchronous>, transform_indices = @transform_2, window_bounds = array<i64: 16, 64>}, {pipeline_mode = #tpu.pipeline_mode<synchronous>, transform_indices = @transform_3, window_bounds = array<i64: 1, 64>}, {pipeline_mode = #tpu.pipeline_mode<synchronous>, transform_indices = @transform_4, window_bounds = array<i64: 1, 64>}, {pipeline_mode = #tpu.pipeline_mode<synchronous>, transform_indices = @transform_5, window_bounds = array<i64: 1, 1>}, {transform_indices = @transform_6, window_bounds = array<i64: 1, 8>}]} {
    %c0 = arith.constant 0 : index
    %c0_0 = arith.constant 0 : index
    %0 = vector.load %arg1[%c0, %c0_0] : memref<8x12xf32, #tpu.memory_space<vmem>>, vector<8x12xf32>
    %c0_1 = arith.constant 0 : index
    %c0_2 = arith.constant 0 : index
    %1 = vector.load %arg2[%c0_1, %c0_2] : memref<8x4xf32, #tpu.memory_space<vmem>>, vector<8x4xf32>
    %2 = tpu.concatenate %0, %1 in 1 : vector<8x12xf32>, vector<8x4xf32> -> vector<8x16xf32>
    %3 = arith.truncf %2 : vector<8x16xf32> to vector<8x16xbf16>
    %c0_3 = arith.constant 0 : index
    %c0_4 = arith.constant 0 : index
    %4 = vector.load %arg3[%c0_3, %c0_4] : memref<16x64xf32, #tpu.memory_space<vmem>>, vector<16x64xf32>
    %5 = arith.truncf %4 : vector<16x64xf32> to vector<16x64xbf16>
    %cst = arith.constant dense<0.000000e+00> : vector<8x64xf32>
    %6 = tpu.matmul %3, %5, %cst {dimension_numbers = #tpu.dot_dimension_numbers<[1], [0], [0], [1], [0, 0, 1, 1], [], []>} : vector<8x16xbf16>, vector<16x64xbf16>, vector<8x64xf32> -> vector<8x64xf32>
    %c0_5 = arith.constant 0 : index
    %c0_6 = arith.constant 0 : index
    %7 = vector.load %arg4[%c0_5, %c0_6] : memref<1x64xf32, #tpu.memory_space<vmem>>, vector<1x64xf32>
    %8 = vector.broadcast %7 : vector<1x64xf32> to vector<8x64xf32>
    %9 = arith.addf %6, %8 : vector<8x64xf32>
    %cst_7 = arith.constant 0.000000e+00 : f32
    %10 = vector.broadcast %cst_7 : f32 to vector<8x64xf32>
    %11 = arith.maximumf %9, %10 : vector<8x64xf32>
    %c0_8 = arith.constant 0 : index
    %c0_9 = arith.constant 0 : index
    %12 = vector.load %arg5[%c0_8, %c0_9] : memref<1x64xf32, #tpu.memory_space<vmem>>, vector<1x64xf32>
    %13 = vector.broadcast %12 : vector<1x64xf32> to vector<8x64xf32>
    %14 = arith.mulf %11, %13 : vector<8x64xf32>
    %cst_10 = arith.constant dense<0.000000e+00> : vector<8xf32>
    %15 = vector.multi_reduction <add>, %14, %cst_10 [1] : vector<8x64xf32> to vector<8xf32>
    %16 = vector.shape_cast %15 : vector<8xf32> to vector<8x1xf32>
    %c0_11 = arith.constant 0 : index
    %c0_12 = arith.constant 0 : index
    %17 = vector.load %arg6[%c0_11, %c0_12] : memref<1x1xf32, #tpu.memory_space<vmem>>, vector<1x1xf32>
    %18 = vector.broadcast %17 : vector<1x1xf32> to vector<8x1xf32>
    %19 = arith.addf %16, %18 : vector<8x1xf32>
    %20 = tpu.transpose %19, [1, 0] : vector<8x1xf32> -> vector<1x8xf32>
    %c0_13 = arith.constant 0 : index
    %c0_14 = arith.constant 0 : index
    %21 = vector.load %arg7[%c0_13, %c0_14] : memref<1x8xf32, #tpu.memory_space<vmem>>, vector<1x8xf32>
    tpu.vector_store %arg7[%c0_13, %c0_14], %20 {strides = array<i32>} : memref<1x8xf32, #tpu.memory_space<vmem>>, vector<1x8xf32>,
    return
  }
  func.func @transform_0(%arg0: i32) -> (i32, i32) {
    %c0_i32 = arith.constant 0 : i32
    %c0_i32_0 = arith.constant 0 : i32
    return %arg0, %c0_i32 : i32, i32
  }
  func.func @transform_1(%arg0: i32) -> (i32, i32) {
    %c0_i32 = arith.constant 0 : i32
    %c0_i32_0 = arith.constant 0 : i32
    return %arg0, %c0_i32 : i32, i32
  }
  func.func @transform_2(%arg0: i32) -> (i32, i32) {
    %c0_i32 = arith.constant 0 : i32
    %c0_i32_0 = arith.constant 0 : i32
    %c0_i32_1 = arith.constant 0 : i32
    return %c0_i32, %c0_i32_0 : i32, i32
  }
  func.func @transform_3(%arg0: i32) -> (i32, i32) {
    %c0_i32 = arith.constant 0 : i32
    %c0_i32_0 = arith.constant 0 : i32
    %c0_i32_1 = arith.constant 0 : i32
    return %c0_i32, %c0_i32_0 : i32, i32
  }
  func.func @transform_4(%arg0: i32) -> (i32, i32) {
    %c0_i32 = arith.constant 0 : i32
    %c0_i32_0 = arith.constant 0 : i32
    %c0_i32_1 = arith.constant 0 : i32
    return %c0_i32, %c0_i32_0 : i32, i32
  }
  func.func @transform_5(%arg0: i32) -> (i32, i32) {
    %c0_i32 = arith.constant 0 : i32
    %c0_i32_0 = arith.constant 0 : i32
    %c0_i32_1 = arith.constant 0 : i32
    return %c0_i32, %c0_i32_0 : i32, i32
  }
  func.func @transform_6(%arg0: i32) -> (i32, i32) {
    %c0_i32 = arith.constant 0 : i32
    %c0_i32_0 = arith.constant 0 : i32
    return %c0_i32, %arg0 : i32, i32
  }
}

</mosaic_0001>

<bundles_post_ra>
// kernel: tpu_custom_call.1
= control target key start
LH: loop header
LB: loop body
LE: loop exit
PB: predicated region body
PF: predicated region fallthrough
CT: control target
= control target key end

     0   :  { %s319_s0 = inlined_call_operand.hbm [shape: f32[8,12], index: 0, kind: input, shape index: {}]   ;;  %s320_s1 = inlined_call_operand.vmem [shape: f32[8,4], index: 1, kind: input, shape index: {}]   ;;  %s321_s2 = inlined_call_operand.vmem [shape: f32[16,64], index: 2, kind: input, shape index: {}]   ;;  %s322_s3 = inlined_call_operand.vmem [shape: f32[1,64], index: 3, kind: input, shape index: {}]   ;;  %s323_s4 = inlined_call_operand.vmem [shape: f32[1,64], index: 4, kind: input, shape index: {}]   ;;  %s324_s5 = inlined_call_operand.<no memory space> [shape: f32[1,1], index: 5, kind: input, shape index: {}]   ;;  %s325_s6 = inlined_call_operand.hbm [shape: f32[1,8], index: 6, kind: output, shape index: {}]  }
   0x1   :  { %v11_v0 = vstv %s324_s5 }
   0x2   :  { %12 = vst [vmem:[#allocation2] sm:$0x1] %v11_v0 }
   0x3   :  { %13 = vsyncpa [#allocation4], 0 }
   0x4   :  { %14 = vsyncpa [#allocation5], 0  ;;  %s237_s23 = smov [#allocation3]   ;;  %s189_s27 = scalar_lea.hbm %s319_s0, 128 }
   0x5   :  { %s21_s24 = sshll.u32 %s237_s23, 4  ;;  %p190_p0 = scmp.ne.s32.totalorder %s319_s0, %s189_s27  ;;  %s22_s24 = int_to_ptr.vmem [resolvable:$true] %s21_s24 }
   0x6   :  { %p193_p1 = scmp.lt.u32.totalorder %s189_s27, %s319_s0 }
   0x8   :  { %p195_p2 = pnand %p193_p1, %p190_p0 }
   0xa   :  { %198 = shalt.err (!%p195_p2)
}
   0xb   :  { %s199_s5 = scalar_lea.vmem %s22_s24, 128  ;;  %p204_p4 = scmp.lt.s32.totalorder %s22_s24, %s22_s24 }
   0xc   :  { %p200_p3 = scmp.ne.s32.totalorder %s22_s24, %s199_s5  ;;  %p205_p5 = scmp.lt.s32.totalorder %s199_s5, %s199_s5 }
   0xe   :  { %p206_p6 = por %p205_p5, %p204_p4 }
  0x10   :  { %p207_p7 = pnand %p206_p6, %p200_p3 }
  0x12   :  { %210 = shalt.err (!%p207_p7)
}
  0x13   :  { %24 = dma.hbm_to_vmem [thread:$0]  %s319_s0, 128, %s22_s24, [#allocation4]  }
  0x14   :  { %233 = dma.done.wait [#allocation4], 128  }
  0x15   :  { %234 = vsyncadd [#allocation4], 4294967168  ;;  %v238_v1 = vmov 0.0   ;;  %vm239_vm0 = vmmov 0   ;;  %v40_v2 = vld [vmem:[%s320_s1] sm:$0xff]  ;;  %s240_s14 = smov 12  }
  0x16   :  { %178 = vmatprep.subr.bf16.mxu0 %v238_v1  ;;  %180 = vmatprep.mubr.msk.bf16.mxu0 %vm239_vm0, %v238_v1  ;;  %v48_v3 = vld [vmem:[%s321_s2] sm:$0xff]  ;;  %v49_v4 = vld [vmem:[%s321_s2 + $0x8] sm:$0xff]  ;;  %vm45_vm1 = vcmask 97280   ;;  %vm58_vm2 = vcmask 130048   ;;  %vm111_vm3 = vcmask 523264   ;;  %s241_s2 = smov [#allocation6]  }
  0x17   :  { %42 = vrot.lane.b32.xlu0 %v40_v2, %s240_s14  ;;  %v50_v5 = vpack.c.bf16 %v49_v4, %v48_v3  ;;  %v39_v6 = vld [vmem:[#allocation3] sm:$0xff]  ;;  %v172_v10 = vld [vmem:[%s322_s3] ss:$0 sm:$0xff]  ;;  %s163_s3 = sshll.u32 %s241_s2, 4  ;;  %vm155_vm4 = vcmask 57344   ;;  %s164_s3 = int_to_ptr.vmem [resolvable:$true] %s163_s3 }
  0x18   :  { %v174_v15 = vld [vmem:[%s323_s4] ss:$0 sm:$0xff]  ;;  %s211_s19 = scalar_lea.vmem %s164_s3, 16  ;;  %s215_s20 = scalar_lea.vmem %s164_s3, 32 }
  0x19   :  { %179 = vmatpush3.bf16.msra.mxu0 %v50_v5  ;;  %v175_v20 = vld [vmem:[#allocation2] ss:$0 sm:$0xff]  ;;  %p212_p8 = scmp.ne.s32.totalorder %s164_s3, %s211_s19  ;;  %p216_p9 = scmp.lt.s32.totalorder %s164_s3, %s164_s3 }
  0x1a   :  { %p217_p10 = scmp.lt.s32.totalorder %s215_s20, %s211_s19 }
  0x1c   :  { %p218_p11 = por %p217_p10, %p216_p9 }
  0x1e   :  { %p219_p12 = pnand %p218_p11, %p212_p8 }
  0x89   :  { %v43_v7 = vpop.permute.xlu0 %42 }
  0x8a   :  { %v46_v8 = vsel %vm45_vm1, %v39_v6, %v43_v7 }
  0x8b   :  { %v47_v9 = vpack.c.bf16 %v46_v8, %v46_v8 }
  0x8d   :  { %181 = vmatmul.mubr.msk.bf16.vlgmr.msra.gmra.mrb[0].mxu0 %vm58_vm2, %v47_v9 }
 0x160   :  { %v96_v11 = vpop.f32.mrb[0].mxu0 }
 0x161   :  { %v97_v12 = vadd.f32 %v172_v10, %v96_v11  ;;  %v182_v13 = vpop.f32.mrb[1].mxu0 }
 0x162   :  { %v99_v14 = vpop.f32.mrb[2].mxu0 }
 0x163   :  { %v102_v16 = vmax.f32 %v97_v12, 0.0  ;;  %v183_v17 = vpop.f32.mrb[3].mxu0 }
 0x165   :  { %v110_v18 = vmul.f32 %v174_v15, %v102_v16 }
 0x167   :  { %v112_v19 = vsel %vm111_vm3, %v110_v18, 0.0 }
 0x168   :  { %113 = vadd.xlane.f32.xlu0 %v112_v19 }
 0x1f5   :  { %v114_v21 = vpop.xlane.xlu0 %113 }
 0x1f6   :  { %v122_v22 = vadd.f32 %v175_v20, %v114_v21 }
 0x1f8   :  { %123 = vxpose.xlu1.b32.start.end [1/1] (short) (narrow) %v122_v22, 8 }
 0x278   :  { %v139_v23 = vpop.trf.xlu1 }
 0x279   :  { %156 = vst.msk [vmem:[#allocation6] sm:$0x1] %vm155_vm4, %v139_v23 }
 0x27a   :  { %222 = shalt.err (!%p219_p12)
}
 0x27b   :  { %s223_s22 = scalar_lea.hbm %s325_s6, 16 }
 0x27c   :  { %p224_p13 = scmp.ne.s32.totalorder %s325_s6, %s223_s22  ;;  %p227_p0 = scmp.lt.u32.totalorder %s223_s22, %s325_s6 }
 0x27e   :  { %p229_p1 = pnand %p227_p0, %p224_p13 }
 0x280   :  { %232 = shalt.err (!%p229_p1)
}
 0x281   :  { %166 = dma.vmem_to_hbm [thread:$0]  %s164_s3, 16, %s325_s6, [#allocation5]  }
 0x282   :  { %235 = dma.done.wait [#allocation5], 16  }
 0x283   :  { %236 = vsyncadd [#allocation5], 4294967280 }
 0x284   :  { %170 = vsyncpa [#allocation4], 1 }
 0x285   :  { %171 = vsyncpa [#allocation5], 1 }

</bundles_post_ra>
